<compile_context>
chip_gen: v5e
topology: v5e:2x2
jax: 0.10.0
libtpu: 0.0.40
codegen_flags: <defaults>
</compile_context>

<pallas_src>
import jax
import jax.numpy as jnp
from jax.experimental import pallas as pl
from jax.experimental.pallas import tpu as pltpu


def gnet_kernel(s1_ref, s2_ref, w1a_ref, w1b_ref, b1_ref, w2_ref, b2_ref, out_ref):
    # s1/s2 arrive as bf16; weights are bf16; accumulate in f32 on the MXU.
    s1 = s1_ref[...]                                                  # (TM, 288) bf16
    s2 = s2_ref[...]                                                  # (TM, 288) bf16

    # Layer 1: Linear(576 -> 256) as two accumulated matmuls (no concat) + ReLU.
    h = jnp.dot(s1, w1a_ref[...], preferred_element_type=jnp.float32)
    h = h + jnp.dot(s2, w1b_ref[...], preferred_element_type=jnp.float32)
    h = jnp.maximum(h + b1_ref[...], 0.0)                            # (TM, 256) f32

    # Layer 2: Linear(256 -> 12).
    y = jnp.dot(h.astype(jnp.bfloat16), w2_ref[...],
                preferred_element_type=jnp.float32)
    y = y + b2_ref[...]                                              # (TM, 12) f32

    # Numerically stable softmax over the feature axis (PyTorch dim=1).
    y = y - jnp.max(y, axis=1, keepdims=True)
    e = jnp.exp(y)
    out_ref[...] = (e / jnp.sum(e, axis=1, keepdims=True)).astype(out_ref.dtype)


def _round_up(x, m):
    return ((x + m - 1) // m) * m


def gnet_forward(state1, state2, w1a, w1b, b1, w2, b2, *, tm=1024):
    """state1/state2: (B, 288), preferably bf16 (f32 is cast at the boundary).
    w1a, w1b: (288, 256) bf16 (W1.T split along the input axis);
    w2: (256, 12) bf16 (W2.T); b1: (1, 256) f32; b2: (1, 12) f32."""
    B = state1.shape[0]
    D_IN, D_H, D_OUT = 288, 256, 12

    # Feed the kernel bf16 activations (no-op if the caller already does).
    if state1.dtype != jnp.bfloat16:
        state1 = state1.astype(jnp.bfloat16)
    if state2.dtype != jnp.bfloat16:
        state2 = state2.astype(jnp.bfloat16)

    # Batch tiling:
    #  * tiny B  -> single whole-array block (block dim == full dim is legal),
    #  * else    -> split into >= 2 tiles (multiple of 8) so v7x's two
    #               TensorCores both get work, capped at tm rows per tile.
    if B <= 8:
        TM = B
    else:
        TM = min(_round_up(pl.cdiv(B, 2), 8), tm)
    num_tiles = pl.cdiv(B, TM)
    grid = (num_tiles,)

    # Advisory cost estimate (bf16 activations, f32 output).
    weight_bytes = (2 * D_IN * D_H + D_H * D_OUT) * 2 + (D_H + D_OUT) * 4
    act_bytes = B * (2 * D_IN) * 2 + B * D_OUT * 4
    cost = pl.CostEstimate(
        flops=2 * B * (2 * D_IN * D_H + D_H * D_OUT),
        transcendentals=B * D_OUT,
        bytes_accessed=weight_bytes + act_bytes,
    )

    if num_tiles > 1:
        # Deeper input buffering: per-step compute is short vs. the state DMA.
        state_spec = lambda: pl.BlockSpec((TM, D_IN), lambda i: (i, 0),
                                          pipeline_mode=pl.Buffered(3))
    else:
        state_spec = lambda: pl.BlockSpec((TM, D_IN), lambda i: (i, 0))

    grid_spec = pltpu.PrefetchScalarGridSpec(
        num_scalar_prefetch=0,
        grid=grid,
        in_specs=[
            state_spec(),                                   # state1 tile (bf16)
            state_spec(),                                   # state2 tile (bf16)
            pl.BlockSpec((D_IN, D_H), lambda i: (0, 0)),    # w1a (resident)
            pl.BlockSpec((D_IN, D_H), lambda i: (0, 0)),    # w1b (resident)
            pl.BlockSpec((1, D_H), lambda i: (0, 0)),       # b1
            pl.BlockSpec((D_H, D_OUT), lambda i: (0, 0)),   # w2
            pl.BlockSpec((1, D_OUT), lambda i: (0, 0)),     # b2
        ],
        out_specs=pl.BlockSpec((TM, D_OUT), lambda i: (i, 0)),
    )

    return pl.pallas_call(
        gnet_kernel,
        out_shape=jax.ShapeDtypeStruct((B, D_OUT), jnp.float32),
        grid_spec=grid_spec,
        compiler_params=pltpu.CompilerParams(dimension_semantics=("parallel",)),
        cost_estimate=cost,
    )(state1, state2, w1a, w1b, b1, w2, b2)


def init_params(key):
    # Deterministic, PyTorch-style uniform(-1/sqrt(fan_in), 1/sqrt(fan_in)) init.
    k1, k2, k3, k4 = jax.random.split(key, 4)
    bound1 = 1.0 / jnp.sqrt(576.0)
    bound2 = 1.0 / jnp.sqrt(256.0)
    # Weights stored already transposed: [in_features, out_features].
    w1_t = jax.random.uniform(k1, (576, 256), jnp.float32, -bound1, bound1)
    b1 = jax.random.uniform(k2, (1, 256), jnp.float32, -bound1, bound1)
    w2_t = jax.random.uniform(k3, (256, 12), jnp.float32, -bound2, bound2)
    b2 = jax.random.uniform(k4, (1, 12), jnp.float32, -bound2, bound2)
    # Split W1.T along the input axis (state1 half / state2 half); store bf16.
    w1a = w1_t[:288].astype(jnp.bfloat16)
    w1b = w1_t[288:].astype(jnp.bfloat16)
    w2 = w2_t.astype(jnp.bfloat16)
    return w1a, w1b, b1, w2, b2


if __name__ == "__main__":
    key = jax.random.PRNGKey(0)
    kp = jax.random.fold_in(key, 0)
    w1a, w1b, b1, w2, b2 = init_params(kp)

    def reference(s1, s2):
        # Same bf16 weight/activation quantization as the kernel, f32 accumulate,
        # exact softmax (mirrors the intentional numerics of the fused kernel).
        s1f = s1.astype(jnp.float32)
        s2f = s2.astype(jnp.float32)
        h = s1f @ w1a.astype(jnp.float32) + s2f @ w1b.astype(jnp.float32) + b1
        h = jnp.maximum(h, 0.0).astype(jnp.bfloat16).astype(jnp.float32)
        y = h @ w2.astype(jnp.float32) + b2
        return jax.nn.softmax(y, axis=1)

    # B=2: tiny-batch single-block path.  B=500: tiled path (TM=256, grid=2,
    # partial edge tile) exercising Buffered(3) and the v7x two-tile split.
    for B in (2, 500):
        k1, k2 = jax.random.split(jax.random.fold_in(key, B))
        state1 = jax.random.normal(k1, (B, 288), jnp.float32).astype(jnp.bfloat16)
        state2 = jax.random.normal(k2, (B, 288), jnp.float32).astype(jnp.bfloat16)

        out = gnet_forward(state1, state2, w1a, w1b, b1, w2, b2)
        out = jax.block_until_ready(out)
        ref = reference(state1, state2)

        assert out.shape == (B, 12)
        assert jnp.allclose(jnp.sum(out, axis=1), 1.0, atol=1e-3)
        assert jnp.allclose(out, ref, atol=1e-2)

    print("KERNEL_OK")
</pallas_src>

<mosaic_0001>
module attributes {stable_mosaic.version = 11 : i64} {
  func.func @gnet_kernel(%arg0: i32, %arg1: memref<2x288xbf16, #tpu.memory_space<vmem>>, %arg2: memref<2x288xbf16, #tpu.memory_space<vmem>>, %arg3: memref<288x256xbf16, #tpu.memory_space<vmem>>, %arg4: memref<288x256xbf16, #tpu.memory_space<vmem>>, %arg5: memref<1x256xf32, #tpu.memory_space<vmem>>, %arg6: memref<256x12xbf16, #tpu.memory_space<vmem>>, %arg7: memref<1x12xf32, #tpu.memory_space<vmem>>, %arg8: memref<2x12xf32, #tpu.memory_space<vmem>>) attributes {dimension_semantics = [#tpu.dimension_semantics<parallel>], iteration_bounds = array<i64: 1>, scalar_prefetch = 0 : i64, scratch_operands = 0 : i64, tpu.core_type = #tpu.core_type<tc>, window_params = [{transform_indices = @transform_0, window_bounds = array<i64: 2, 288>}, {transform_indices = @transform_1, window_bounds = array<i64: 2, 288>}, {pipeline_mode = #tpu.pipeline_mode<synchronous>, transform_indices = @transform_2, window_bounds = array<i64: 288, 256>}, {pipeline_mode = #tpu.pipeline_mode<synchronous>, transform_indices = @transform_3, window_bounds = array<i64: 288, 256>}, {pipeline_mode = #tpu.pipeline_mode<synchronous>, transform_indices = @transform_4, window_bounds = array<i64: 1, 256>}, {pipeline_mode = #tpu.pipeline_mode<synchronous>, transform_indices = @transform_5, window_bounds = array<i64: 256, 12>}, {pipeline_mode = #tpu.pipeline_mode<synchronous>, transform_indices = @transform_6, window_bounds = array<i64: 1, 12>}, {transform_indices = @transform_7, window_bounds = array<i64: 2, 12>}]} {
    %c0 = arith.constant 0 : index
    %c0_0 = arith.constant 0 : index
    %0 = vector.load %arg1[%c0, %c0_0] : memref<2x288xbf16, #tpu.memory_space<vmem>>, vector<2x288xbf16>
    %c0_1 = arith.constant 0 : index
    %c0_2 = arith.constant 0 : index
    %1 = vector.load %arg2[%c0_1, %c0_2] : memref<2x288xbf16, #tpu.memory_space<vmem>>, vector<2x288xbf16>
    %c0_3 = arith.constant 0 : index
    %c0_4 = arith.constant 0 : index
    %2 = vector.load %arg3[%c0_3, %c0_4] : memref<288x256xbf16, #tpu.memory_space<vmem>>, vector<288x256xbf16>
    %cst = arith.constant dense<0.000000e+00> : vector<2x256xf32>
    %3 = tpu.matmul %0, %2, %cst {dimension_numbers = #tpu.dot_dimension_numbers<[1], [0], [0], [1], [0, 0, 1, 1], [], []>} : vector<2x288xbf16>, vector<288x256xbf16>, vector<2x256xf32> -> vector<2x256xf32>
    %c0_5 = arith.constant 0 : index
    %c0_6 = arith.constant 0 : index
    %4 = vector.load %arg4[%c0_5, %c0_6] : memref<288x256xbf16, #tpu.memory_space<vmem>>, vector<288x256xbf16>
    %cst_7 = arith.constant dense<0.000000e+00> : vector<2x256xf32>
    %5 = tpu.matmul %1, %4, %cst_7 {dimension_numbers = #tpu.dot_dimension_numbers<[1], [0], [0], [1], [0, 0, 1, 1], [], []>} : vector<2x288xbf16>, vector<288x256xbf16>, vector<2x256xf32> -> vector<2x256xf32>
    %6 = arith.addf %3, %5 : vector<2x256xf32>
    %c0_8 = arith.constant 0 : index
    %c0_9 = arith.constant 0 : index
    %7 = vector.load %arg5[%c0_8, %c0_9] : memref<1x256xf32, #tpu.memory_space<vmem>>, vector<1x256xf32>
    %8 = vector.broadcast %7 : vector<1x256xf32> to vector<2x256xf32>
    %9 = arith.addf %6, %8 : vector<2x256xf32>
    %cst_10 = arith.constant 0.000000e+00 : f32
    %10 = vector.broadcast %cst_10 : f32 to vector<2x256xf32>
    %11 = arith.maximumf %9, %10 : vector<2x256xf32>
    %12 = arith.truncf %11 : vector<2x256xf32> to vector<2x256xbf16>
    %c0_11 = arith.constant 0 : index
    %c0_12 = arith.constant 0 : index
    %13 = vector.load %arg6[%c0_11, %c0_12] : memref<256x12xbf16, #tpu.memory_space<vmem>>, vector<256x12xbf16>
    %cst_13 = arith.constant dense<0.000000e+00> : vector<2x12xf32>
    %14 = tpu.matmul %12, %13, %cst_13 {dimension_numbers = #tpu.dot_dimension_numbers<[1], [0], [0], [1], [0, 0, 1, 1], [], []>} : vector<2x256xbf16>, vector<256x12xbf16>, vector<2x12xf32> -> vector<2x12xf32>
    %c0_14 = arith.constant 0 : index
    %c0_15 = arith.constant 0 : index
    %15 = vector.load %arg7[%c0_14, %c0_15] : memref<1x12xf32, #tpu.memory_space<vmem>>, vector<1x12xf32>
    %16 = vector.broadcast %15 : vector<1x12xf32> to vector<2x12xf32>
    %17 = arith.addf %14, %16 : vector<2x12xf32>
    %cst_16 = arith.constant dense<0xFF800000> : vector<2xf32>
    %18 = vector.multi_reduction <maximumf>, %17, %cst_16 [1] : vector<2x12xf32> to vector<2xf32>
    %19 = vector.shape_cast %18 : vector<2xf32> to vector<2x1xf32>
    %20 = vector.broadcast %19 : vector<2x1xf32> to vector<2x12xf32>
    %21 = arith.subf %17, %20 : vector<2x12xf32>
    %22 = math.exp %21 : vector<2x12xf32>
    %cst_17 = arith.constant dense<0.000000e+00> : vector<2xf32>
    %23 = vector.multi_reduction <add>, %22, %cst_17 [1] : vector<2x12xf32> to vector<2xf32>
    %24 = vector.shape_cast %23 : vector<2xf32> to vector<2x1xf32>
    %25 = vector.broadcast %24 : vector<2x1xf32> to vector<2x12xf32>
    %26 = arith.divf %22, %25 : vector<2x12xf32>
    %c0_18 = arith.constant 0 : index
    %c0_19 = arith.constant 0 : index
    %27 = vector.load %arg8[%c0_18, %c0_19] : memref<2x12xf32, #tpu.memory_space<vmem>>, vector<2x12xf32>
    tpu.vector_store %arg8[%c0_18, %c0_19], %26 {strides = array<i32>} : memref<2x12xf32, #tpu.memory_space<vmem>>, vector<2x12xf32>,
    return
  }
  func.func @transform_0(%arg0: i32) -> (i32, i32) {
    %c0_i32 = arith.constant 0 : i32
    %c0_i32_0 = arith.constant 0 : i32
    return %arg0, %c0_i32 : i32, i32
  }
  func.func @transform_1(%arg0: i32) -> (i32, i32) {
    %c0_i32 = arith.constant 0 : i32
    %c0_i32_0 = arith.constant 0 : i32
    return %arg0, %c0_i32 : i32, i32
  }
  func.func @transform_2(%arg0: i32) -> (i32, i32) {
    %c0_i32 = arith.constant 0 : i32
    %c0_i32_0 = arith.constant 0 : i32
    %c0_i32_1 = arith.constant 0 : i32
    return %c0_i32, %c0_i32_0 : i32, i32
  }
  func.func @transform_3(%arg0: i32) -> (i32, i32) {
    %c0_i32 = arith.constant 0 : i32
    %c0_i32_0 = arith.constant 0 : i32
    %c0_i32_1 = arith.constant 0 : i32
    return %c0_i32, %c0_i32_0 : i32, i32
  }
  func.func @transform_4(%arg0: i32) -> (i32, i32) {
    %c0_i32 = arith.constant 0 : i32
    %c0_i32_0 = arith.constant 0 : i32
    %c0_i32_1 = arith.constant 0 : i32
    return %c0_i32, %c0_i32_0 : i32, i32
  }
  func.func @transform_5(%arg0: i32) -> (i32, i32) {
    %c0_i32 = arith.constant 0 : i32
    %c0_i32_0 = arith.constant 0 : i32
    %c0_i32_1 = arith.constant 0 : i32
    return %c0_i32, %c0_i32_0 : i32, i32
  }
  func.func @transform_6(%arg0: i32) -> (i32, i32) {
    %c0_i32 = arith.constant 0 : i32
    %c0_i32_0 = arith.constant 0 : i32
    %c0_i32_1 = arith.constant 0 : i32
    return %c0_i32, %c0_i32_0 : i32, i32
  }
  func.func @transform_7(%arg0: i32) -> (i32, i32) {
    %c0_i32 = arith.constant 0 : i32
    %c0_i32_0 = arith.constant 0 : i32
    return %arg0, %c0_i32 : i32, i32
  }
}

</mosaic_0001>

<bundles_post_ra>
// kernel: tpu_custom_call.1
= control target key start
LH: loop header
LB: loop body
LE: loop exit
PB: predicated region body
PF: predicated region fallthrough
CT: control target
= control target key end

     0   :  { %12 = vsyncpa [#allocation3], 0  ;;  %s1544_s0 = inlined_call_operand.vmem [shape: bf16[2,288], index: 0, kind: input, shape index: {}]   ;;  %s1545_s1 = inlined_call_operand.vmem [shape: bf16[2,288], index: 1, kind: input, shape index: {}]   ;;  %s1546_s2 = inlined_call_operand.hbm [shape: bf16[288,256], index: 2, kind: input, shape index: {}]   ;;  %s1547_s3 = inlined_call_operand.hbm [shape: bf16[288,256], index: 3, kind: input, shape index: {}]   ;;  %s1548_s4 = inlined_call_operand.vmem [shape: f32[1,256], index: 4, kind: input, shape index: {}]   ;;  %s1549_s5 = inlined_call_operand.vmem [shape: bf16[256,12], index: 5, kind: input, shape index: {}]   ;;  %s1550_s6 = inlined_call_operand.vmem [shape: f32[1,12], index: 6, kind: input, shape index: {}]   ;;  %s1551_s7 = inlined_call_operand.hbm [shape: f32[2,12], index: 7, kind: output, shape index: {}]  }
   0x1   :  { %13 = vsyncpa [#allocation6], 0 }
   0x2   :  { %14 = vsyncpa [#allocation4], 0  ;;  %s23_s26 = sshll.u32 %s1546_s2, 4  ;;  %s1415_s27 = smov [#allocation2]   ;;  %s24_s26 = int_to_ptr.hbm [resolvable:$true] %s23_s26 }
   0x3   :  { %s25_s28 = sshll.u32 %s1415_s27, 4  ;;  %s36_s8 = sshll.u32 %s1547_s3, 4  ;;  %s26_s28 = int_to_ptr.vmem [resolvable:$true] %s25_s28  ;;  %s37_s8 = int_to_ptr.hbm [resolvable:$true] %s36_s8 }
   0x4   :  { %s1416_s9 = smov 128   ;;  %s1417_s10 = smov 8  }
   0x5   :  { %31 = dma.hbm_to_vmem [thread:$0]  %s24_s26, 4608, %s26_s28, [#allocation3], %s1416_s9, %s1416_s9, %s1417_s10  }
   0x6   :  { %s1418_s11 = smov [#allocation5]  }
   0x7   :  { %s38_s12 = sshll.u32 %s1418_s11, 4  ;;  %s39_s12 = int_to_ptr.vmem [resolvable:$true] %s38_s12 }
   0x8   :  { %44 = dma.hbm_to_vmem [thread:$0]  %s37_s8, 4608, %s39_s12, [#allocation6], %s1416_s9, %s1416_s9, %s1417_s10  }
   0x9   :  { %1409 = dma.done.wait [#allocation3], 4608  }
   0xa   :  { %1410 = vsyncadd [#allocation3], 4294962688 }
   0xb   :  { %1411 = dma.done.wait [#allocation6], 4608  }
   0xc   :  { %1412 = vsyncadd [#allocation6], 4294962688  ;;  %v941_v0 = vld [vmem:[#allocation5 + $0x70] sm:$0xf]  ;;  %v1290_v1 = vld [vmem:[#allocation5 + $0x74] sm:$0xf0] }
   0xd   :  { %v1005_v2 = vld [vmem:[#allocation5 + $0xf0] sm:$0xf]  ;;  %v942_v3 = vor.u32 %v1290_v1, %v941_v0  ;;  %v1306_v4 = vld [vmem:[#allocation5 + $0xf4] sm:$0xf0]  ;;  %v1289_v9 = vld [vmem:[#allocation5 + $0x74] sm:$0xf] }
   0xe   :  { %v1021_v5 = vld [vmem:[#allocation5 + $0x110] sm:$0xf]  ;;  %v1310_v6 = vld [vmem:[#allocation5 + $0x114] sm:$0xf0]  ;;  %v1006_v7 = vor.u32 %v1306_v4, %v1005_v2  ;;  %v943_v10 = vld [vmem:[#allocation5 + $0x78] sm:$0xf0] }
   0xf   :  { %v1022_v8 = vor.u32 %v1310_v6, %v1021_v5  ;;  %v933_v11 = vld [vmem:[#allocation5 + $0x60] sm:$0xf]  ;;  %324 = vmatpush.bf16.msra.mxu0 %v942_v3  ;;  %v946_v12 = vor.u32 %v1289_v9, %v943_v10  ;;  %v1288_v13 = vld [vmem:[#allocation5 + $0x64] sm:$0xf0]  ;;  %v1287_v20 = vld [vmem:[#allocation5 + $0x64] sm:$0xf] }
  0x10   :  { %v997_v14 = vld [vmem:[#allocation5 + $0xe0] sm:$0xf]  ;;  %v1304_v15 = vld [vmem:[#allocation5 + $0xe4] sm:$0xf0]  ;;  %337 = vmatpush.bf16.msra.mxu1 %v1006_v7  ;;  %v934_v16 = vor.u32 %v1288_v13, %v933_v11  ;;  %v935_v22 = vld [vmem:[#allocation5 + $0x68] sm:$0xf0] }
  0x11   :  { %356 = vmatpush.bf16.msra.mxu2 %v1022_v8  ;;  %v998_v17 = vor.u32 %v1304_v15, %v997_v14  ;;  %v1013_v18 = vld [vmem:[#allocation5 + $0x100] sm:$0xf]  ;;  %v1308_v19 = vld [vmem:[#allocation5 + $0x104] sm:$0xf0]  ;;  %363 = vmatpush.bf16.msra.mxu3 %v946_v12  ;;  %v1305_v23 = vld [vmem:[#allocation5 + $0xf4] sm:$0xf]  ;;  %v938_v25 = vor.u32 %v1287_v20, %v935_v22 }
  0x12   :  { %v1014_v21 = vor.u32 %v1308_v19, %v1013_v18  ;;  %v1007_v24 = vld [vmem:[#allocation5 + $0xf8] sm:$0xf0]  ;;  %v925_v27 = vld [vmem:[#allocation5 + $0x50] sm:$0xf]  ;;  %v1286_v28 = vld [vmem:[#allocation5 + $0x54] sm:$0xf0] }
  0x13   :  { %v1010_v26 = vor.u32 %v1305_v23, %v1007_v24  ;;  %v989_v29 = vld [vmem:[#allocation5 + $0xd0] sm:$0xf]  ;;  %325 = vmatpush.bf16.msra.mxu0 %v934_v16  ;;  %v926_v30 = vor.u32 %v1286_v28, %v925_v27  ;;  %v1302_v31 = vld [vmem:[#allocation5 + $0xd4] sm:$0xf0]  ;;  %v1285_v32 = vld [vmem:[#allocation5 + $0x54] sm:$0xf] }
  0x14   :  { %v927_v33 = vld [vmem:[#allocation5 + $0x58] sm:$0xf0]  ;;  %338 = vmatpush.bf16.msra.mxu1 %v998_v17  ;;  %v990_v34 = vor.u32 %v1302_v31, %v989_v29  ;;  %v1303_v35 = vld [vmem:[#allocation5 + $0xe4] sm:$0xf]  ;;  %v999_v36 = vld [vmem:[#allocation5 + $0xe8] sm:$0xf0] }
  0x15   :  { %357 = vmatpush.bf16.msra.mxu2 %v1014_v21  ;;  %v917_v37 = vld [vmem:[#allocation5 + $0x40] sm:$0xf]  ;;  %364 = vmatpush.bf16.msra.mxu3 %v938_v25  ;;  %v930_v38 = vor.u32 %v1285_v32, %v927_v33  ;;  %v1002_v39 = vor.u32 %v1303_v35, %v999_v36  ;;  %v1284_v40 = vld [vmem:[#allocation5 + $0x44] sm:$0xf0]  ;;  %v1283_v43 = vld [vmem:[#allocation5 + $0x44] sm:$0xf] }
  0x16   :  { %v981_v41 = vld [vmem:[#allocation5 + $0xc0] sm:$0xf]  ;;  %v1300_v42 = vld [vmem:[#allocation5 + $0xc4] sm:$0xf0]  ;;  %v919_v44 = vld [vmem:[#allocation5 + $0x48] sm:$0xf0]  ;;  %v918_v46 = vor.u32 %v1284_v40, %v917_v37 }
  0x17   :  { %v1301_v45 = vld [vmem:[#allocation5 + $0xd4] sm:$0xf]  ;;  %326 = vmatpush.bf16.msra.mxu0 %v926_v30  ;;  %v991_v47 = vld [vmem:[#allocation5 + $0xd8] sm:$0xf0]  ;;  %v909_v48 = vld [vmem:[#allocation5 + $0x30] sm:$0xf]  ;;  %v982_v49 = vor.u32 %v1300_v42, %v981_v41  ;;  %v922_v53 = vor.u32 %v1283_v43, %v919_v44 }
  0x18   :  { %339 = vmatpush.bf16.msra.mxu1 %v990_v34  ;;  %v1282_v50 = vld [vmem:[#allocation5 + $0x34] sm:$0xf0]  ;;  %v973_v51 = vld [vmem:[#allocation5 + $0xb0] sm:$0xf]  ;;  %v994_v54 = vor.u32 %v1301_v45, %v991_v47  ;;  %v1281_v55 = vld [vmem:[#allocation5 + $0x34] sm:$0xf] }
  0x19   :  { %376 = vmatpush.bf16.msrb.mxu2 %v1010_v26  ;;  %v1298_v52 = vld [vmem:[#allocation5 + $0xb4] sm:$0xf0]  ;;  %365 = vmatpush.bf16.msra.mxu3 %v930_v38  ;;  %v911_v56 = vld [vmem:[#allocation5 + $0x38] sm:$0xf0]  ;;  %v1299_v58 = vld [vmem:[#allocation5 + $0xc4] sm:$0xf]  ;;  %v910_v60 = vor.u32 %v1282_v50, %v909_v48 }
  0x1a   :  { %v61_v57 = vld [vmem:[%s1545_s1] sm:$0x7]  ;;  %v983_v59 = vld [vmem:[#allocation5 + $0xc8] sm:$0xf0]  ;;  %v974_v61 = vor.u32 %v1298_v52, %v973_v51  ;;  %v901_v62 = vld [vmem:[#allocation5 + $0x20] sm:$0xf]  ;;  %v914_v0 = vor.u32 %v1281_v55, %v911_v56 }
  0x1b   :  { %135 = vst [vmem:[#allocation1] ss:$9 sm:$0xff] %v61_v57  ;;  %327 = vmatpush.bf16.msra.mxu0 %v918_v46  ;;  %v1280_v63 = vld [vmem:[#allocation5 + $0x24] sm:$0xf0]  ;;  %v986_v1 = vor.u32 %v1299_v58, %v983_v59  ;;  %v965_v2 = vld [vmem:[#allocation5 + $0xa0] sm:$0xf] }
  0x1c   :  { %340 = vmatpush.bf16.msra.mxu1 %v982_v49  ;;  %v1296_v3 = vld [vmem:[#allocation5 + $0xa4] sm:$0xf0]  ;;  %v1279_v4 = vld [vmem:[#allocation5 + $0x24] sm:$0xf]  ;;  %v903_v5 = vld [vmem:[#allocation5 + $0x28] sm:$0xf0]  ;;  %v902_v8 = vor.u32 %v1280_v63, %v901_v62 }
  0x1d   :  { %377 = vmatpush.bf16.msrb.mxu2 %v1002_v39  ;;  %366 = vmatpush.bf16.msra.mxu3 %v922_v53  ;;  %v1297_v6 = vld [vmem:[#allocation5 + $0xb4] sm:$0xf]  ;;  %v975_v7 = vld [vmem:[#allocation5 + $0xb8] sm:$0xf0]  ;;  %vm321_vm0 = vcmask 261120   ;;  %v966_v10 = vor.u32 %v1296_v3, %v965_v2  ;;  %v906_v15 = vor.u32 %v1279_v4, %v903_v5  ;;  %vm839_vm1 = vcmask 91136  }
  0x1e   :  { %v893_v9 = vld [vmem:[#allocation5 + $0x10] sm:$0xf]  ;;  %v1278_v11 = vld [vmem:[#allocation5 + $0x14] sm:$0xf0]  ;;  %v978_v16 = vor.u32 %v1297_v6, %v975_v7  ;;  %v1277_v17 = vld [vmem:[#allocation5 + $0x14] sm:$0xf] }
  0x1f   :  { %328 = vmatpush.bf16.msra.mxu0 %v910_v60  ;;  %v957_v12 = vld [vmem:[#allocation5 + $0x90] sm:$0xf]  ;;  %v1294_v13 = vld [vmem:[#allocation5 + $0x94] sm:$0xf0]  ;;  %v895_v18 = vld [vmem:[#allocation5 + $0x18] sm:$0xf0]  ;;  %v894_v22 = vor.u32 %v1278_v11, %v893_v9 }
  0x20   :  { %341 = vmatpush.bf16.msra.mxu1 %v974_v61  ;;  %v1295_v19 = vld [vmem:[#allocation5 + $0xa4] sm:$0xf]  ;;  %v967_v20 = vld [vmem:[#allocation5 + $0xa8] sm:$0xf0]  ;;  %v885_v21 = vld [vmem:[#allocation5] sm:$0xf]  ;;  %v958_v26 = vor.u32 %v1294_v13, %v957_v12  ;;  %v898_v32 = vor.u32 %v1277_v17, %v895_v18 }
  0x21   :  { %378 = vmatpush.bf16.msrb.mxu2 %v994_v54  ;;  %367 = vmatpush.bf16.msra.mxu3 %v914_v0  ;;  %v1276_v23 = vld [vmem:[#allocation5 + $0x4] sm:$0xf0]  ;;  %v949_v24 = vld [vmem:[#allocation5 + $0x80] sm:$0xf]  ;;  %v1275_v27 = vld [vmem:[#allocation5 + $0x4] sm:$0xf]  ;;  %v970_v33 = vor.u32 %v1295_v19, %v967_v20 }
  0x22   :  { %v1469_v14 = vld [vmem:[#allocation1 + $0x12] sm:$0xff]  ;;  %v1293_v29 = vld [vmem:[#allocation5 + $0x94] sm:$0xf]  ;;  %v1089_v31 = vld [vmem:[#allocation2 + $0x78] sm:$0xf0]  ;;  %v886_v39 = vor.u32 %v1276_v23, %v885_v21  ;;  %s872_s23 = sshll.u32 %s1551_s7, 4  ;;  %s873_s23 = int_to_ptr.hbm [resolvable:$true] %s872_s23 }
  0x23   :  { %1027 = vmatmul.msk.bf16.vlgmr.msra.gmra.mxu2 %vm321_vm0, %v1469_v14  ;;  %329 = vmatpush.bf16.msra.mxu0 %v902_v8  ;;  %v1292_v25 = vld [vmem:[#allocation5 + $0x84] sm:$0xf0]  ;;  %v887_v28 = vld [vmem:[#allocation5 + $0x8] sm:$0xf0]  ;;  %v1253_v30 = vld [vmem:[#allocation2 + $0x74] sm:$0xf] }
  0x24   :  { %342 = vmatpush.bf16.msra.mxu1 %v966_v10  ;;  %v136_v34 = vld [vmem:[#allocation1] sm:$0xff]  ;;  %v1476_v36 = vld [vmem:[#allocation1 + $0x9] sm:$0xff]  ;;  %v1309_v38 = vld [vmem:[#allocation5 + $0x114] sm:$0xf]  ;;  %v950_v43 = vor.u32 %v1292_v25, %v949_v24  ;;  %v1092_v44 = vor.u32 %v1253_v30, %v1089_v31  ;;  %v890_v45 = vor.u32 %v1275_v27, %v887_v28 }
  0x25   :  { %379 = vmatpush.bf16.msrb.mxu2 %v986_v1  ;;  %368 = vmatpush.bf16.msra.mxu3 %v906_v15  ;;  %v60_v35 = vld [vmem:[%s1544_s0] sm:$0x7]  ;;  %v959_v37 = vld [vmem:[#allocation5 + $0x98] sm:$0xf0]  ;;  %v1151_v41 = vld [vmem:[#allocation2 + $0xf0] sm:$0xf] }
  0x26   :  { %403 = vst [vmem:[#allocation1] ss:$9 sm:$0xff] %v60_v35  ;;  %v1023_v40 = vld [vmem:[#allocation5 + $0x118] sm:$0xf0]  ;;  %v1270_v42 = vld [vmem:[#allocation2 + $0xf4] sm:$0xf0]  ;;  %v962_v46 = vor.u32 %v1293_v29, %v959_v37 }
  0x27   :  { %330 = vmatpush.bf16.msra.mxu0 %v894_v22  ;;  %v1291_v47 = vld [vmem:[#allocation5 + $0x84] sm:$0xf]  ;;  %v1081_v49 = vld [vmem:[#allocation2 + $0x68] sm:$0xf0]  ;;  %v1026_v50 = vor.u32 %v1309_v38, %v1023_v40  ;;  %v1152_v51 = vor.u32 %v1270_v42, %v1151_v41  ;;  %v1143_v55 = vld [vmem:[#allocation2 + $0xe0] sm:$0xf] }
  0x28   :  { %343 = vmatpush.bf16.msra.mxu1 %v958_v26  ;;  %v1251_v48 = vld [vmem:[#allocation2 + $0x64] sm:$0xf]  ;;  %v951_v52 = vld [vmem:[#allocation5 + $0x88] sm:$0xf0]  ;;  %v1268_v56 = vld [vmem:[#allocation2 + $0xe4] sm:$0xf0] }
  0x29   :  { %380 = vmatpush.bf16.msrb.mxu2 %v978_v16  ;;  %369 = vmatpush.bf16.msra.mxu3 %v898_v32  ;;  %v1307_v53 = vld [vmem:[#allocation5 + $0x104] sm:$0xf]  ;;  %v1015_v54 = vld [vmem:[#allocation5 + $0x108] sm:$0xf0]  ;;  %v1087_v57 = vld [vmem:[#allocation2 + $0x70] sm:$0xf]  ;;  %v1084_v58 = vor.u32 %v1251_v48, %v1081_v49  ;;  %v954_v62 = vor.u32 %v1291_v47, %v951_v52  ;;  %v1144_v2 = vor.u32 %v1268_v56, %v1143_v55 }
  0x2a   :  { %v1254_v59 = vld [vmem:[#allocation2 + $0x74] sm:$0xf0]  ;;  %v1167_v60 = vld [vmem:[#allocation2 + $0x110] sm:$0xf]  ;;  %v1249_v63 = vld [vmem:[#allocation2 + $0x54] sm:$0xf]  ;;  %v1018_v1 = vor.u32 %v1307_v53, %v1015_v54 }
  0x2b   :  { %331 = vmatpush.bf16.msra.mxu0 %v886_v39  ;;  %v1274_v61 = vld [vmem:[#allocation2 + $0x114] sm:$0xf0]  ;;  %v1073_v0 = vld [vmem:[#allocation2 + $0x58] sm:$0xf0]  ;;  %v1135_v3 = vld [vmem:[#allocation2 + $0xd0] sm:$0xf]  ;;  %v1088_v4 = vor.u32 %v1254_v59, %v1087_v57 }
  0x2c   :  { %344 = vmatpush.bf16.msra.mxu1 %v950_v43  ;;  %v1168_v5 = vor.u32 %v1274_v61, %v1167_v60  ;;  %v1266_v6 = vld [vmem:[#allocation2 + $0xd4] sm:$0xf0]  ;;  %v1079_v7 = vld [vmem:[#allocation2 + $0x60] sm:$0xf]  ;;  %v1252_v8 = vld [vmem:[#allocation2 + $0x64] sm:$0xf0]  ;;  %v1076_v9 = vor.u32 %v1249_v63, %v1073_v0 }
  0x2d   :  { %381 = vmatpush.bf16.msrb.mxu2 %v970_v33  ;;  %370 = vmatpush.bf16.msra.mxu3 %v890_v45  ;;  %v1159_v10 = vld [vmem:[#allocation2 + $0x100] sm:$0xf]  ;;  %v1272_v11 = vld [vmem:[#allocation2 + $0x104] sm:$0xf0]  ;;  %v1269_v12 = vld [vmem:[#allocation2 + $0xf4] sm:$0xf]  ;;  %v1136_v17 = vor.u32 %v1266_v6, %v1135_v3  ;;  %v1080_v18 = vor.u32 %v1252_v8, %v1079_v7 }
  0x2e   :  { %332 = vmatmul.bf16.vlgmr.msra.gmra.mxu0 %v136_v34  ;;  %v1153_v13 = vld [vmem:[#allocation2 + $0xf8] sm:$0xf0]  ;;  %v1247_v15 = vld [vmem:[#allocation2 + $0x44] sm:$0xf]  ;;  %v1065_v16 = vld [vmem:[#allocation2 + $0x48] sm:$0xf0]  ;;  %v1160_v19 = vor.u32 %v1272_v11, %v1159_v10 }
  0x2f   :  { %630 = vmatpush.bf16.msrb.mxu0 %v1092_v44  ;;  %345 = vmatmul.bf16.vlgmr.msra.gmra.mxu1 %v1476_v36  ;;  %v1127_v20 = vld [vmem:[#allocation2 + $0xc0] sm:$0xf]  ;;  %v1264_v21 = vld [vmem:[#allocation2 + $0xc4] sm:$0xf0]  ;;  %v1156_v22 = vor.u32 %v1269_v12, %v1153_v13  ;;  %v1068_v23 = vor.u32 %v1247_v15, %v1065_v16  ;;  %v1071_v24 = vld [vmem:[#allocation2 + $0x50] sm:$0xf] }
  0x30   :  { %395 = vmatpush.bf16.msrb.mxu1 %v1026_v50  ;;  %371 = vmatmul.bf16.vlgmr.msra.gmra.mxu3 %v136_v34  ;;  %v1250_v25 = vld [vmem:[#allocation2 + $0x54] sm:$0xf0]  ;;  %v1267_v26 = vld [vmem:[#allocation2 + $0xe4] sm:$0xf]  ;;  %v1145_v27 = vld [vmem:[#allocation2 + $0xe8] sm:$0xf0]  ;;  %v1128_v30 = vor.u32 %v1264_v21, %v1127_v20 }
  0x31   :  { %382 = vmatpush.bf16.msrb.mxu2 %v962_v46  ;;  %604 = vmatpush.bf16.msrb.mxu3 %v1152_v51  ;;  %v1245_v28 = vld [vmem:[#allocation2 + $0x34] sm:$0xf]  ;;  %v1057_v29 = vld [vmem:[#allocation2 + $0x38] sm:$0xf0]  ;;  %v1072_v31 = vor.u32 %v1250_v25, %v1071_v24  ;;  %v1119_v32 = vld [vmem:[#allocation2 + $0xb0] sm:$0xf]  ;;  %v1148_v34 = vor.u32 %v1267_v26, %v1145_v27 }
  0x32   :  { %v1262_v33 = vld [vmem:[#allocation2 + $0xb4] sm:$0xf0]  ;;  %v1060_v35 = vor.u32 %v1245_v28, %v1057_v29  ;;  %v1248_v37 = vld [vmem:[#allocation2 + $0x44] sm:$0xf0]  ;;  %v1265_v38 = vld [vmem:[#allocation2 + $0xd4] sm:$0xf] }
  0x33   :  { %631 = vmatpush.bf16.msrb.mxu0 %v1084_v58  ;;  %v1137_v39 = vld [vmem:[#allocation2 + $0xd8] sm:$0xf0]  ;;  %v1120_v40 = vor.u32 %v1262_v33, %v1119_v32  ;;  %v1243_v41 = vld [vmem:[#allocation2 + $0x24] sm:$0xf]  ;;  %v1049_v42 = vld [vmem:[#allocation2 + $0x28] sm:$0xf0] }
  0x34   :  { %396 = vmatpush.bf16.msrb.mxu1 %v1018_v1  ;;  %v1111_v44 = vld [vmem:[#allocation2 + $0xa0] sm:$0xf]  ;;  %v1260_v45 = vld [vmem:[#allocation2 + $0xa4] sm:$0xf0]  ;;  %v1140_v46 = vor.u32 %v1265_v38, %v1137_v39  ;;  %v1055_v47 = vld [vmem:[#allocation2 + $0x30] sm:$0xf]  ;;  %v1052_v49 = vor.u32 %v1243_v41, %v1049_v42 }
  0x35   :  { %383 = vmatpush.bf16.msrb.mxu2 %v954_v62  ;;  %605 = vmatpush.bf16.msrb.mxu3 %v1144_v2  ;;  %v1246_v48 = vld [vmem:[#allocation2 + $0x34] sm:$0xf0]  ;;  %v1263_v50 = vld [vmem:[#allocation2 + $0xc4] sm:$0xf]  ;;  %v1129_v51 = vld [vmem:[#allocation2 + $0xc8] sm:$0xf0]  ;;  %v1112_v52 = vor.u32 %v1260_v45, %v1111_v44 }
  0x36   :  { %v1241_v53 = vld [vmem:[#allocation2 + $0x14] sm:$0xf]  ;;  %v1041_v54 = vld [vmem:[#allocation2 + $0x18] sm:$0xf0]  ;;  %v1056_v55 = vor.u32 %v1246_v48, %v1055_v47  ;;  %v1103_v56 = vld [vmem:[#allocation2 + $0x90] sm:$0xf]  ;;  %v1132_v58 = vor.u32 %v1263_v50, %v1129_v51 }
  0x37   :  { %632 = vmatpush.bf16.msrb.mxu0 %v1076_v9  ;;  %v1258_v57 = vld [vmem:[#allocation2 + $0x94] sm:$0xf0]  ;;  %v1047_v59 = vld [vmem:[#allocation2 + $0x20] sm:$0xf]  ;;  %v1244_v60 = vld [vmem:[#allocation2 + $0x24] sm:$0xf0]  ;;  %v1044_v61 = vor.u32 %v1241_v53, %v1041_v54 }
  0x38   :  { %591 = vmatpush.bf16.msra.mxu1 %v1088_v4  ;;  %384 = vmatmul.bf16.vlgmr.msrb.gmra.mxu2 %v1476_v36  ;;  %v1063_v36 = vld [vmem:[#allocation2 + $0x40] sm:$0xf]  ;;  %v1261_v62 = vld [vmem:[#allocation2 + $0xb4] sm:$0xf]  ;;  %v1121_v63 = vld [vmem:[#allocation2 + $0xb8] sm:$0xf0]  ;;  %v1104_v1 = vor.u32 %v1258_v57, %v1103_v56  ;;  %v1048_v4 = vor.u32 %v1244_v60, %v1047_v59 }
  0x39   :  { %623 = vmatpush.bf16.msra.mxu2 %v1168_v5  ;;  %606 = vmatpush.bf16.msrb.mxu3 %v1136_v17  ;;  %v1064_v43 = vor.u32 %v1248_v37, %v1063_v36  ;;  %v406_v0 = vld [vmem:[#allocation1 + $0x12] sm:$0xff]  ;;  %v1239_v2 = vld [vmem:[#allocation2 + $0x4] sm:$0xf]  ;;  %v1095_v5 = vld [vmem:[#allocation2 + $0x80] sm:$0xf]  ;;  %v1124_v7 = vor.u32 %v1261_v62, %v1121_v63 }
  0x3a   :  { %v1033_v3 = vld [vmem:[#allocation2 + $0x8] sm:$0xf0]  ;;  %v1256_v6 = vld [vmem:[#allocation2 + $0x84] sm:$0xf0]  ;;  %v1242_v8 = vld [vmem:[#allocation2 + $0x14] sm:$0xf0] }
  0x3b   :  { %633 = vmatpush.bf16.msrb.mxu0 %v1068_v23  ;;  %v1036_v9 = vor.u32 %v1239_v2, %v1033_v3  ;;  %v1259_v10 = vld [vmem:[#allocation2 + $0xa4] sm:$0xf]  ;;  %v1113_v11 = vld [vmem:[#allocation2 + $0xa8] sm:$0xf0]  ;;  %v1096_v12 = vor.u32 %v1256_v6, %v1095_v5  ;;  %v404_v15 = vld [vmem:[#allocation1] sm:$0xff] }
  0x3c   :  { %592 = vmatpush.bf16.msra.mxu1 %v1080_v18  ;;  %v1116_v16 = vor.u32 %v1259_v10, %v1113_v11  ;;  %v1031_v17 = vld [vmem:[#allocation2] sm:$0xf]  ;;  %v1240_v18 = vld [vmem:[#allocation2 + $0x4] sm:$0xf0]  ;;  %v1105_v20 = vld [vmem:[#allocation2 + $0x98] sm:$0xf0] }
  0x3d   :  { %624 = vmatpush.bf16.msra.mxu2 %v1160_v19  ;;  %607 = vmatpush.bf16.msrb.mxu3 %v1128_v30  ;;  %v1257_v19 = vld [vmem:[#allocation2 + $0x94] sm:$0xf]  ;;  %v405_v23 = vld [vmem:[#allocation1 + $0x9] sm:$0xff]  ;;  %v1032_v24 = vor.u32 %v1240_v18, %v1031_v17  ;;  %v1097_v28 = vld [vmem:[#allocation2 + $0x88] sm:$0xf0] }
  0x3e   :  { %v1273_v21 = vld [vmem:[#allocation2 + $0x114] sm:$0xf]  ;;  %v1108_v25 = vor.u32 %v1257_v19, %v1105_v20  ;;  %v1255_v27 = vld [vmem:[#allocation2 + $0x84] sm:$0xf]  ;;  %v1161_v30 = vld [vmem:[#allocation2 + $0x108] sm:$0xf0] }
  0x3f   :  { %634 = vmatpush.bf16.msrb.mxu0 %v1060_v35  ;;  %1028 = vmatmul.msk.bf16.vlgmr.msrb.gmra.mxu1 %vm321_vm0, %v1469_v14  ;;  %v1039_v14 = vld [vmem:[#allocation2 + $0x10] sm:$0xf]  ;;  %v1271_v29 = vld [vmem:[#allocation2 + $0x104] sm:$0xf]  ;;  %v1315_v37 = vld [vmem:[%s1549_s5 + $0x20] sm:$0xff] }
  0x40   :  { %593 = vmatpush.bf16.msra.mxu1 %v1072_v31  ;;  %v1040_v13 = vor.u32 %v1242_v8, %v1039_v14  ;;  %v1100_v31 = vor.u32 %v1255_v27, %v1097_v28  ;;  %v1164_v32 = vor.u32 %v1271_v29, %v1161_v30  ;;  %v1318_v33 = vld [vmem:[%s1549_s5 + $0x38] sm:$0xff]  ;;  %v1316_v35 = vld [vmem:[%s1549_s5 + $0x28] sm:$0xff]  ;;  %v1313_v44 = vld [vmem:[%s1549_s5 + $0x10] sm:$0xff] }
  0x41   :  { %643 = vmatpush.bf16.msrb.mxu2 %v1156_v22  ;;  %608 = vmatpush.bf16.msrb.mxu3 %v1120_v40  ;;  %v1169_v22 = vld [vmem:[#allocation2 + $0x118] sm:$0xf0]  ;;  %v1326_v38 = vld [vmem:[%s1549_s5 + $0x78] sm:$0xff]  ;;  %v1325_v40 = vld [vmem:[%s1549_s5 + $0x70] sm:$0xff] }
  0x42   :  { %v1172_v26 = vor.u32 %v1273_v21, %v1169_v22  ;;  %v1314_v39 = vld [vmem:[%s1549_s5 + $0x18] sm:$0xff]  ;;  %v1324_v45 = vld [vmem:[%s1549_s5 + $0x68] sm:$0xff]  ;;  %v1323_v48 = vld [vmem:[%s1549_s5 + $0x60] sm:$0xff] }
  0x43   :  { %635 = vmatpush.bf16.msrb.mxu0 %v1052_v49  ;;  %v1312_v47 = vld [vmem:[%s1549_s5 + $0x8] sm:$0xff]  ;;  %v1322_v53 = vld [vmem:[%s1549_s5 + $0x58] sm:$0xff]  ;;  %v1319_v59 = vld [vmem:[%s1549_s5 + $0x40] sm:$0xff] }
  0x44   :  { %594 = vmatpush.bf16.msra.mxu1 %v1064_v43  ;;  %v669_v2 = vld [vmem:[%s1548_s4] sm:$0x3] }
  0x45   :  { %644 = vmatpush.bf16.msrb.mxu2 %v1148_v34  ;;  %609 = vmatpush.bf16.msrb.mxu3 %v1112_v52  ;;  %v1317_v34 = vld [vmem:[%s1549_s5 + $0x30] sm:$0xff]  ;;  %v1311_v52 = vld [vmem:[%s1549_s5] sm:$0xff]  ;;  %v671_v14 = vperm.slane %v669_v2, 0  ;;  %v672_v20 = vperm.slane %v669_v2, 1 }
  0x46   :  { %v1332_v29 = vld [vmem:[%s1550_s6] ss:$0 sm:$0xff]  ;;  %s1419_s6 = smov [#allocation7]  }
  0x47   :  { %636 = vmatpush.bf16.msrb.mxu0 %v1044_v61  ;;  %s870_s20 = sshll.u32 %s1419_s6, 4  ;;  %s871_s20 = int_to_ptr.vmem [resolvable:$true] %s870_s20 }
  0x48   :  { %595 = vmatpush.bf16.msra.mxu1 %v1056_v55  ;;  %1173 = vmatmul.msk.bf16.vlgmr.msra.gmra.mxu2 %vm321_vm0, %v406_v0  ;;  %v1321_v55 = vld [vmem:[%s1549_s5 + $0x50] sm:$0xff] }
  0x49   :  { %645 = vmatpush.bf16.msrb.mxu2 %v1140_v46  ;;  %610 = vmatpush.bf16.msrb.mxu3 %v1104_v1 }
  0x4b   :  { %637 = vmatpush.bf16.msrb.mxu0 %v1036_v9 }
  0x4c   :  { %596 = vmatpush.bf16.msra.mxu1 %v1048_v4 }
  0x4d   :  { %646 = vmatpush.bf16.msrb.mxu2 %v1132_v58  ;;  %611 = vmatpush.bf16.msrb.mxu3 %v1096_v12  ;;  %v1320_v58 = vld [vmem:[%s1549_s5 + $0x48] sm:$0xff] }
  0x4e   :  { %638 = vmatmul.bf16.vlgmr.msrb.gmra.mxu0 %v404_v15 }
  0x4f   :  { %826 = vmatpush.bf16.msra.mxu0 %v1326_v38 }
  0x50   :  { %597 = vmatpush.bf16.msra.mxu1 %v1040_v13  ;;  %612 = vmatmul.bf16.vlgmr.msrb.gmra.mxu3 %v405_v23 }
  0x51   :  { %647 = vmatpush.bf16.msrb.mxu2 %v1124_v7  ;;  %813 = vmatpush.bf16.msra.mxu3 %v1318_v33 }
  0x53   :  { %827 = vmatpush.bf16.msra.mxu0 %v1325_v40 }
  0x54   :  { %598 = vmatpush.bf16.msra.mxu1 %v1032_v24 }
  0x55   :  { %648 = vmatpush.bf16.msrb.mxu2 %v1116_v16  ;;  %814 = vmatpush.bf16.msra.mxu3 %v1317_v34 }
  0x57   :  { %599 = vmatmul.bf16.vlgmr.msra.gmra.mxu1 %v404_v15  ;;  %828 = vmatpush.bf16.msra.mxu0 %v1324_v45 }
  0x58   :  { %662 = vmatpush.bf16.msrb.mxu1 %v1172_v26 }
  0x59   :  { %649 = vmatpush.bf16.msrb.mxu2 %v1108_v25  ;;  %815 = vmatpush.bf16.msra.mxu3 %v1316_v35 }
  0x5b   :  { %829 = vmatpush.bf16.msra.mxu0 %v1323_v48 }
  0x5c   :  { %663 = vmatpush.bf16.msrb.mxu1 %v1164_v32 }
  0x5d   :  { %650 = vmatpush.bf16.msrb.mxu2 %v1100_v31  ;;  %816 = vmatpush.bf16.msra.mxu3 %v1315_v37 }
  0x5f   :  { %830 = vmatpush.bf16.msra.mxu0 %v1322_v53 }
  0x60   :  { %651 = vmatmul.bf16.vlgmr.msrb.gmra.mxu2 %v405_v23 }
  0x61   :  { %817 = vmatpush.bf16.msra.mxu3 %v1314_v39 }
  0x63   :  { %831 = vmatpush.bf16.msra.mxu0 %v1321_v55 }
  0x65   :  { %818 = vmatpush.bf16.msra.mxu3 %v1313_v44 }
  0x67   :  { %1174 = vmatmul.msk.bf16.vlgmr.msrb.gmra.mxu1 %vm321_vm0, %v406_v0  ;;  %832 = vmatpush.bf16.msra.mxu0 %v1320_v58 }
  0x69   :  { %819 = vmatpush.bf16.msra.mxu3 %v1312_v47 }
  0x6b   :  { %833 = vmatpush.bf16.msra.mxu0 %v1319_v59 }
  0x6d   :  { %820 = vmatpush.bf16.msra.mxu3 %v1311_v52 }
  0xa6   :  { %v359_v36 = vpop.f32.mrf.mxu2 }
  0xab   :  { %v333_v41 = vpop.f32.mrf.mxu0 }
  0xac   :  { %v346_v42 = vpop.f32.mrf.mxu1 }
  0xad   :  { %v347_v63 = vadd.f32 %v346_v42, %v333_v41 }
  0xae   :  { %v361_v43 = vpop.f32.mrf.mxu2 }
  0xaf   :  { %v360_v0 = vadd.f32 %v359_v36, %v347_v63 }
  0xb3   :  { %v372_v46 = vpop.f32.mrf.mxu3  ;;  %v335_v50 = vpop.f32.mrf.mxu0 }
  0xb4   :  { %v348_v49 = vpop.f32.mrf.mxu1 }
  0xbb   :  { %v385_v51 = vpop.f32.mrf.mxu2  ;;  %v374_v54 = vpop.f32.mrf.mxu3 }
  0xbc   :  { %v398_v56 = vpop.f32.mrf.mxu1  ;;  %v386_v9 = vadd.f32 %v385_v51, %v372_v46 }
  0xbe   :  { %v399_v15 = vadd.f32 %v398_v56, %v386_v9 }
  0xc3   :  { %v387_v57 = vpop.f32.mrf.mxu2 }
  0xc4   :  { %v400_v60 = vpop.f32.mrf.mxu1 }
  0xcb   :  { %v626_v61 = vpop.f32.mrf.mxu2  ;;  %v639_v62 = vpop.f32.mrf.mxu0 }
  0xcc   :  { %v640_v18 = vadd.f32 %v639_v62, %v399_v15 }
  0xd3   :  { %v613_v4 = vpop.f32.mrf.mxu3  ;;  %v628_v5 = vpop.f32.mrf.mxu2 }
  0xd4   :  { %v600_v1 = vpop.f32.mrf.mxu1  ;;  %v641_v6 = vpop.f32.mrf.mxu0 }
  0xd5   :  { %v601_v3 = vadd.f32 %v600_v1, %v360_v0 }
  0xd7   :  { %v614_v7 = vadd.f32 %v613_v4, %v601_v3 }
  0xd9   :  { %v627_v8 = vadd.f32 %v626_v61, %v614_v7 }
  0xdb   :  { %v675_v10 = vadd.f32 %v671_v14, %v627_v8  ;;  %v615_v13 = vpop.f32.mrf.mxu3 }
  0xdc   :  { %v602_v11 = vpop.f32.mrf.mxu1 }
  0xdd   :  { %v677_v12 = vmax.f32 %v675_v10, 0.0 }
  0xdf   :  { %v679_v16 = vpack.c.bf16 %v677_v12, %v677_v12 }
  0xe1   :  { %821 = vmatmul.bf16.vlgmr.msra.gmra.mxu3 %v679_v16 }
  0xe3   :  { %v652_v17 = vpop.f32.mrf.mxu2 }
  0xe4   :  { %v653_v19 = vadd.f32 %v652_v17, %v640_v18  ;;  %v665_v21 = vpop.f32.mrf.mxu1 }
  0xe6   :  { %v666_v22 = vadd.f32 %v665_v21, %v653_v19 }
  0xe8   :  { %v676_v23 = vadd.f32 %v672_v20, %v666_v22 }
  0xea   :  { %v678_v25 = vmax.f32 %v676_v23, 0.0 }
  0xeb   :  { %v654_v24 = vpop.f32.mrf.mxu2 }
  0xec   :  { %v680_v26 = vpack.c.bf16 %v678_v25, %v678_v25  ;;  %v667_v27 = vpop.f32.mrf.mxu1 }
  0xee   :  { %834 = vmatmul.bf16.vlgmr.msra.gmra.mxu0 %v680_v26 }
 0x164   :  { %v822_v28 = vpop.f32.mrf.mxu3 }
 0x165   :  { %v823_v30 = vadd.f32 %v1332_v29, %v822_v28 }
 0x16b   :  { %v835_v31 = vpop.f32.mrf.mxu0 }
 0x16c   :  { %v836_v32 = vadd.f32 %v835_v31, %v823_v30  ;;  %v824_v33 = vpop.f32.mrf.mxu3 }
 0x16e   :  { %v840_v34 = vsel %vm839_vm1, %v836_v32, -inf }
 0x16f   :  { %841 = vmax.xlane.f32.xlu0 %v840_v34 }
 0x173   :  { %v837_v35 = vpop.f32.mrf.mxu0 }
 0x1e2   :  { %v842_v36 = vpop.xlane.xlu0 %841 }
 0x1e3   :  { %v843_v37 = vsub.f32 %v836_v32, %v842_v36 }
 0x1e5   :  { %v844_v38 = vmul.f32 1.442695, %v843_v37 }
 0x1e7   :  { %1333 = vpow2.f32 %v844_v38 }
 0x1ed   :  { %v1334_v39 = vpop.eup %1333 }
 0x1ee   :  { %v846_v40 = vsel %vm839_vm1, %v1334_v39, 0.0 }
 0x1ef   :  { %847 = vadd.xlane.f32.xlu0 %v846_v40 }
 0x262   :  { %v848_v41 = vpop.xlane.xlu0 %847 }
 0x263   :  { %1335 = vrcp.f32 %v848_v41  ;;  %v860_v45 = vand.u32 2147483648, %v848_v41  ;;  %v858_v47 = vand.u32 2147483647, %v848_v41  ;;  %vm854_vm3 = vweird.f32 %v848_v41 }
 0x265   :  { %v861_v49 = vor.u32 1.1754944e-38, %v860_v45  ;;  %vm859_vm5 = vcmp.eq.f32.partialorder %v858_v47, 8.507059e+37 }
 0x269   :  { %v1336_v42 = vpop.eup %1335 }
 0x26a   :  { %v850_v43 = vmul.f32 %v1336_v42, %v848_v41  ;;  %vm855_vm2 = vweird.f32 %v1336_v42 }
 0x26b   :  { %vm856_vm4 = vmor %vm854_vm3, %vm855_vm2 }
 0x26c   :  { %v851_v44 = vsub.f32 1.0, %v850_v43 }
 0x26e   :  { %v852_v46 = vmul.f32 %v1336_v42, %v851_v44 }
 0x270   :  { %v853_v48 = vadd.f32 %v1336_v42, %v852_v46 }
 0x272   :  { %v857_v50 = vsel %vm856_vm4, %v1336_v42, %v853_v48 }
 0x273   :  { %v862_v51 = vsel %vm859_vm5, %v861_v49, %v857_v50 }
 0x274   :  { %v863_v52 = vmul.f32 %v1334_v39, %v862_v51 }
 0x276   :  { %864 = vst.msk [vmem:[#allocation7] sm:$0x3] %vm839_vm1, %v863_v52 }
 0x277   :  { %875 = dma.vmem_to_hbm [thread:$0]  %s871_s20, 32, %s873_s23, [#allocation4]  }
 0x278   :  { %1413 = dma.done.wait [#allocation4], 32  }
 0x279   :  { %1414 = vsyncadd [#allocation4], 4294967264 }
 0x27a   :  { %880 = vsyncpa [#allocation3], 1 }
 0x27b   :  { %881 = vsyncpa [#allocation6], 1 }
 0x27c   :  { %882 = vsyncpa [#allocation4], 1 }

</bundles_post_ra>
